<compile_context>
chip_gen: v7x
topology: tpu7x:2x2x1
jax: 0.10.0
libtpu: 0.0.40
codegen_flags: <defaults>
</compile_context>

<pallas_src>
import functools

import jax
import jax.numpy as jnp
from jax.experimental import pallas as pl
from jax.experimental.pallas import tpu as pltpu


def _round_up(x, m):
    return ((x + m - 1) // m) * m


def _cdiv(a, b):
    return (a + b - 1) // b


def _first_token_mask(tile_row0, tm, T):
    # 1.0 everywhere except global rows where row % T == 0 (token 0 of each
    # sequence).  Computed once per output tile in the epilogue.
    rows = tile_row0 + jax.lax.broadcasted_iota(jnp.int32, (tm, 1), 0)
    return (rows % T != 0).astype(jnp.float32)


def _kernel_single_k(x_ref, w_ref, b_ref, o_ref, *, T, TM):
    # x_ref: (TM, Dp)  w_ref: (Dp, TN)  b_ref: (1, TN) f32  o_ref: (TM, TN)
    y = jnp.dot(x_ref[...], w_ref[...], preferred_element_type=jnp.float32)
    y = y + b_ref[...]
    mask = _first_token_mask(pl.program_id(0) * TM, TM, T)
    o_ref[...] = (y * mask).astype(o_ref.dtype)


def _kernel_multi_k(x_ref, w_ref, b_ref, o_ref, acc_ref, *, T, TM):
    # x_ref: (TM, TK)  w_ref: (TK, TN)  b_ref: (1, TN) f32
    # o_ref: (TM, TN)  acc_ref: (TM, TN) f32 resident across K
    k = pl.program_id(2)

    @pl.when(k == 0)
    def _init():
        acc_ref[...] = jnp.zeros_like(acc_ref)

    acc_ref[...] += jnp.dot(
        x_ref[...], w_ref[...], preferred_element_type=jnp.float32
    )

    @pl.when(k == pl.num_programs(2) - 1)
    def _finalize():
        mask = _first_token_mask(pl.program_id(0) * TM, TM, T)
        o_ref[...] = ((acc_ref[...] + b_ref[...]) * mask).astype(o_ref.dtype)


def ignore_first_token_linear(x, w, b, *, compute_dtype=jnp.bfloat16,
                              out_dtype=None):
    """out[:, 0, :] = 0 ; out[:, 1:, :] = x[:, 1:, :] @ w + b.

    x: (B, T, D), w: (D, D_out), b: (D_out,).
    compute_dtype: MXU input dtype (default bf16, f32 accumulation).  Pass
    None (or jnp.float32) for full-precision inputs.
    """
    B, T, D = x.shape
    D_out = w.shape[1]
    out_dtype = x.dtype if out_dtype is None else out_dtype

    # ---- flatten (B, T) -> M ---------------------------------------------
    M = B * T
    x2 = x.reshape(M, D)
    if compute_dtype is not None:
        x2 = x2.astype(compute_dtype)
        w = w.astype(compute_dtype)

    # ---- chip-aware tile ceilings ------------------------------------------
    try:
        vmem_cap = int(pltpu.get_tpu_info().vmem_capacity_bytes)
    except Exception:
        vmem_cap = 64 * 1024 * 1024  # conservative (v7x per-TC)
    big_vmem = vmem_cap >= 100 * 1024 * 1024  # v5e/v6e 128 MiB vs v7x 64 MiB
    TM_MAX = 1024 if big_vmem else 512
    TN_MAX = 1024 if big_vmem else 512

    # ---- N tiling: lane-dense, padded to a multiple of TN ------------------
    Dop = _round_up(D_out, 128)
    if Dop <= TN_MAX:
        TN = Dop
    else:
        TN = TN_MAX
        Dop = _round_up(Dop, TN)
    num_j = Dop // TN

    # ---- K tiling: whole-D when small, bounded TK=512 (padded K) otherwise -
    if D <= 2048:
        TK, Dp = D, D
    else:
        TK = 512
        Dp = _round_up(D, TK)
    num_k = Dp // TK

    # ---- M tiling: adaptive (minimize padding), >=2 (i,j) tiles for 2-TC ---
    num_i = max(1, _cdiv(M, TM_MAX))
    TM = _round_up(_cdiv(M, num_i), 8)
    if num_i * num_j < 2 and M > 8:
        num_i = 2
        TM = _round_up(_cdiv(M, 2), 8)
    Mp = num_i * TM

    # ---- zero padding (does not change the matmul result) ------------------
    if (Mp, Dp) != (M, D):
        x2 = jnp.pad(x2, ((0, Mp - M), (0, Dp - D)))
    if (Dp, Dop) != w.shape:
        w = jnp.pad(w, ((0, Dp - D), (0, Dop - D_out)))
    b_p = jnp.pad(b, (0, Dop - D_out)) if Dop != D_out else b
    b_p = b_p.reshape(1, Dop).astype(jnp.float32)

    # ---- VMEM budget (double-buffered in/out + scratch + headroom) ---------
    itm_x = x2.dtype.itemsize
    itm_w = w.dtype.itemsize
    itm_o = jnp.dtype(out_dtype).itemsize
    vmem_need = 2 * (TM * TK * itm_x + TK * TN * itm_w + TM * TN * itm_o
                     + 8 * TN * 4)                 # bias pads to 8 sublanes
    if num_k > 1:
        vmem_need += TM * TN * 4                   # f32 accumulator scratch
    vmem_limit = int(min(max(vmem_need + 2 * 1024 * 1024, 32 * 1024 * 1024),
                         int(vmem_cap * 0.85)))

    cost = pl.CostEstimate(
        flops=2 * Mp * Dp * Dop,
        transcendentals=0,
        bytes_accessed=(Mp * Dp * itm_x + Dp * Dop * itm_w + Dop * 4
                        + Mp * Dop * itm_o),
    )

    if num_k == 1:
        kernel = functools.partial(_kernel_single_k, T=T, TM=TM)
        grid_spec = pltpu.PrefetchScalarGridSpec(
            num_scalar_prefetch=0,
            grid=(num_i, num_j),
            in_specs=[
                pl.BlockSpec((TM, Dp), lambda i, j: (i, 0)),   # x
                pl.BlockSpec((Dp, TN), lambda i, j: (0, j)),   # w
                pl.BlockSpec((1, TN), lambda i, j: (0, j)),    # bias
            ],
            out_specs=pl.BlockSpec((TM, TN), lambda i, j: (i, j)),
            scratch_shapes=[],
        )
        dim_sem = ("parallel", "parallel")
    else:
        kernel = functools.partial(_kernel_multi_k, T=T, TM=TM)
        grid_spec = pltpu.PrefetchScalarGridSpec(
            num_scalar_prefetch=0,
            grid=(num_i, num_j, num_k),
            in_specs=[
                pl.BlockSpec((TM, TK), lambda i, j, k: (i, k)),  # x
                pl.BlockSpec((TK, TN), lambda i, j, k: (k, j)),  # w
                pl.BlockSpec((1, TN), lambda i, j, k: (0, j)),   # bias
            ],
            out_specs=pl.BlockSpec((TM, TN), lambda i, j, k: (i, j)),
            scratch_shapes=[pltpu.VMEM((TM, TN), jnp.float32)],
        )
        dim_sem = ("parallel", "parallel", "arbitrary")

    out = pl.pallas_call(
        kernel,
        out_shape=jax.ShapeDtypeStruct((Mp, Dop), out_dtype),
        grid_spec=grid_spec,
        compiler_params=pltpu.CompilerParams(
            dimension_semantics=dim_sem,
            vmem_limit_bytes=vmem_limit,
        ),
        cost_estimate=cost,
    )(x2, w, b_p)

    # Strip padding and restore (B, T, D_out).
    return out[:M, :D_out].reshape(B, T, D_out)


if __name__ == "__main__":
    # Small shapes: batch=2, seq=8, hidden=32 (D_out = 32).
    B, T, D, D_out = 2, 8, 32, 32

    key = jax.random.PRNGKey(0)
    kx, kw, kb = jax.random.split(key, 3)
    x = jax.random.normal(kx, (B, T, D), dtype=jnp.float32)
    # Deterministic synthetic parameters for the Linear submodule.
    w = jax.random.normal(kw, (D, D_out), dtype=jnp.float32) * 0.05
    b = jax.random.normal(kb, (D_out,), dtype=jnp.float32) * 0.05

    # Pure-JAX reference of the PyTorch wrapper semantics.
    sub = jnp.einsum("btd,de->bte", x[:, 1:, :], w) + b
    ref = jnp.concatenate(
        [jnp.zeros((B, 1, D_out), dtype=sub.dtype), sub], axis=-2
    )

    # f32 path (exact) -------------------------------------------------------
    out_f32 = jax.block_until_ready(
        ignore_first_token_linear(x, w, b, compute_dtype=None))
    assert out_f32.shape == (B, T, D_out)
    assert jnp.allclose(out_f32, ref, atol=1e-5, rtol=1e-5)

    # default bf16-compute path (f32 accumulation) ---------------------------
    out_bf16 = jax.block_until_ready(ignore_first_token_linear(x, w, b))
    assert out_bf16.shape == (B, T, D_out)
    assert jnp.allclose(out_bf16, ref, atol=2e-2, rtol=2e-2)
    # Token-0 rows must be exactly zero regardless of compute dtype.
    assert jnp.all(out_bf16[:, 0, :] == 0) and jnp.all(out_f32[:, 0, :] == 0)

    print("KERNEL_OK")
</pallas_src>

<mosaic_0001>
module attributes {stable_mosaic.version = 11 : i64} {
  func.func @_kernel_single_k(%arg0: i32, %arg1: i32, %arg2: memref<8x32xf32, #tpu.memory_space<vmem>>, %arg3: memref<32x128xf32, #tpu.memory_space<vmem>>, %arg4: memref<1x128xf32, #tpu.memory_space<vmem>>, %arg5: memref<8x128xf32, #tpu.memory_space<vmem>>) attributes {dimension_semantics = [#tpu.dimension_semantics<parallel>, #tpu.dimension_semantics<parallel>], iteration_bounds = array<i64: 2, 1>, scalar_prefetch = 0 : i64, scratch_operands = 0 : i64, tpu.core_type = #tpu.core_type<tc>, window_params = [{transform_indices = @transform_0, window_bounds = array<i64: 8, 32>}, {transform_indices = @transform_1, window_bounds = array<i64: 32, 128>}, {transform_indices = @transform_2, window_bounds = array<i64: 1, 128>}, {transform_indices = @transform_3, window_bounds = array<i64: 8, 128>}]} {
    %c0 = arith.constant 0 : index
    %c0_0 = arith.constant 0 : index
    %0 = vector.load %arg2[%c0, %c0_0] : memref<8x32xf32, #tpu.memory_space<vmem>>, vector<8x32xf32>
    %c0_1 = arith.constant 0 : index
    %c0_2 = arith.constant 0 : index
    %1 = vector.load %arg3[%c0_1, %c0_2] : memref<32x128xf32, #tpu.memory_space<vmem>>, vector<32x128xf32>
    %cst = arith.constant dense<0.000000e+00> : vector<8x128xf32>
    %2 = tpu.matmul %0, %1, %cst {dimension_numbers = #tpu.dot_dimension_numbers<[1], [0], [0], [1], [0, 0, 1, 1], [], []>} : vector<8x32xf32>, vector<32x128xf32>, vector<8x128xf32> -> vector<8x128xf32>
    %c0_3 = arith.constant 0 : index
    %c0_4 = arith.constant 0 : index
    %3 = vector.load %arg4[%c0_3, %c0_4] : memref<1x128xf32, #tpu.memory_space<vmem>>, vector<1x128xf32>
    %4 = vector.broadcast %3 : vector<1x128xf32> to vector<8x128xf32>
    %5 = arith.addf %2, %4 : vector<8x128xf32>
    %c8_i32 = arith.constant 8 : i32
    %6 = arith.muli %arg0, %c8_i32 : i32
    %7 = tpu.iota {dimensions = array<i32: 0>} : vector<8x1xi32>
    %8 = vector.broadcast %6 : i32 to vector<8x1xi32>
    %9 = arith.addi %8, %7 : vector<8x1xi32>
    %c8_i32_5 = arith.constant 8 : i32
    %c0_i32 = arith.constant 0 : i32
    %10 = arith.cmpi eq, %c8_i32_5, %c0_i32 : i32
    %c1_i32 = arith.constant 1 : i32
    %11 = arith.select %10, %c1_i32, %c8_i32_5 : i32
    %12 = vector.broadcast %11 : i32 to vector<8x1xi32>
    %13 = arith.remsi %9, %12 : vector<8x1xi32>
    %c0_i32_6 = arith.constant 0 : i32
    %14 = vector.broadcast %c0_i32_6 : i32 to vector<8x1xi32>
    %15 = arith.cmpi ne, %13, %14 : vector<8x1xi32>
    %c0_i32_7 = arith.constant 0 : i32
    %16 = vector.broadcast %c0_i32_7 : i32 to vector<8x1xi32>
    %17 = arith.cmpi slt, %13, %16 : vector<8x1xi32>
    %c0_i32_8 = arith.constant 0 : i32
    %18 = arith.cmpi slt, %11, %c0_i32_8 : i32
    %19 = vector.broadcast %18 : i1 to vector<8x1xi1>
    %20 = vector.broadcast %19 : vector<8x1xi1> to vector<8x1xi1>
    %21 = arith.xori %17, %20 : vector<8x1xi1>
    %22 = arith.andi %21, %15 : vector<8x1xi1>
    %23 = vector.broadcast %11 : i32 to vector<8x1xi32>
    %24 = arith.addi %13, %23 : vector<8x1xi32>
    %25 = arith.select %22, %24, %13 : vector<8x1xi1>, vector<8x1xi32>
    %c0_i32_9 = arith.constant 0 : i32
    %26 = vector.broadcast %c0_i32_9 : i32 to vector<8x1xi32>
    %27 = arith.cmpi ne, %25, %26 : vector<8x1xi32>
    %28 = arith.extui %27 : vector<8x1xi1> to vector<8x1xi32>
    %29 = arith.sitofp %28 : vector<8x1xi32> to vector<8x1xf32>
    %30 = vector.broadcast %29 : vector<8x1xf32> to vector<8x128xf32>
    %31 = arith.mulf %5, %30 : vector<8x128xf32>
    %c0_10 = arith.constant 0 : index
    %c0_11 = arith.constant 0 : index
    %32 = vector.load %arg5[%c0_10, %c0_11] : memref<8x128xf32, #tpu.memory_space<vmem>>, vector<8x128xf32>
    tpu.vector_store %arg5[%c0_10, %c0_11], %31 {strides = array<i32>} : memref<8x128xf32, #tpu.memory_space<vmem>>, vector<8x128xf32>,
    return
  }
  func.func @transform_0(%arg0: i32, %arg1: i32) -> (i32, i32) {
    %c0_i32 = arith.constant 0 : i32
    %c0_i32_0 = arith.constant 0 : i32
    return %arg0, %c0_i32 : i32, i32
  }
  func.func @transform_1(%arg0: i32, %arg1: i32) -> (i32, i32) {
    %c0_i32 = arith.constant 0 : i32
    %c0_i32_0 = arith.constant 0 : i32
    return %c0_i32, %arg1 : i32, i32
  }
  func.func @transform_2(%arg0: i32, %arg1: i32) -> (i32, i32) {
    %c0_i32 = arith.constant 0 : i32
    %c0_i32_0 = arith.constant 0 : i32
    return %c0_i32, %arg1 : i32, i32
  }
  func.func @transform_3(%arg0: i32, %arg1: i32) -> (i32, i32) {
    %c0_i32 = arith.constant 0 : i32
    return %arg0, %arg1 : i32, i32
  }
}

</mosaic_0001>

<bundles_post_ra>
// kernel: tpu_custom_call.1
= control target key start
LH: loop header
LB: loop body
LE: loop exit
PB: predicated region body
PF: predicated region fallthrough
CT: control target
= control target key end

     0   :  { %8 = vsyncpa [#allocation3], 0  ;;  %s979_s0 = inlined_call_operand.hbm [shape: f32[16,32], index: 0, kind: input, shape index: {}]   ;;  %s980_s1 = inlined_call_operand.hbm [shape: f32[32,128], index: 1, kind: input, shape index: {}]   ;;  %s981_s2 = inlined_call_operand.vmem [shape: f32[1,128], index: 2, kind: input, shape index: {}]   ;;  %s982_s3 = inlined_call_operand.hbm [shape: f32[16,128], index: 3, kind: output, shape index: {}]  }
   0x1   :  { %10 = vsyncpa [#allocation3 + $0x1], 0 }
   0x2   :  { %11 = vsyncpa [#allocation6], 0 }
   0x3   :  { %12 = vsyncpa [#allocation4], 0 }
   0x4   :  { %14 = vsyncpa [#allocation4 + $0x1], 0  ;;  %s757_s12 = smov 0   ;;  %s759_s13 = smov 0  }
   0x5   :  { %s761_s14 = smov 0   ;;  %s763_s15 = smov 0  }
   0x6   :  { %s765_s16 = smov 0   ;;  %s767_s17 = smov 0  }
   0x7 LB: > { %s462_s18 = sadd.s32 4294967295, %s727_s17   ;;  %s463_s19 = sadd.s32 4294967294, %s727_s17   ;;  %s727_s17 = sphi %s767_s17, %s20_s17   ;;  %s723_s16 = sphi %s765_s16, %s1006_s16   ;;  %s719_s15 = sphi %s763_s15, %s1005_s15   ;;  %s715_s14 = sphi %s761_s14, %s1004_s14   ;;  %s711_s13 = sphi %s759_s13, %s1003_s13   ;;  %s707_s12 = sphi %s757_s12, %s1002_s12  }
   0x8   : > { %p52_p0 = scmp.ne.s32.totalorder %s711_s13, %s707_s12  ;;  %p791_p1 = scmp.eq.s32.totalorder %s462_s18, 0 }
   0x9   : > { %p795_p2 = scmp.eq.s32.totalorder %s462_s18, 1  ;;  %p136_p3 = scmp.eq.s32.totalorder %s463_s19, 1 }
   0xa   : > { %s987_s20 = scalar_select %p791_p1, 1, 0 }
   0xb   : > { %s988_s21 = scalar_select %p795_p2, 1, 0 }
   0xc   : > { %p801_p4 = por %p791_p1, %p52_p0  ;;  %p464_p5 = scmp.ge.s32.totalorder %s727_s17, 1 }
   0xd   : > { %p806_p6 = por %p136_p3, %p52_p0  ;;  %p143_p7 = scmp.lt.s32.totalorder %s727_s17, 3 }
   0xe   : > { %s989_s22 = scalar_select %p801_p4, 1, 0 }
   0xf   : > { %s990_s23 = scalar_select %p806_p6, 1, 0 }
  0x10   : > { %p811_p8 = pnand %p464_p5, %p143_p7  ;;  %s729_s25 = smov [#allocation5]  }
  0x11   : > { %s157_s26 = sshll.u32 %s729_s25, 4  ;;  %s32_s28 = sadd.s32 1, %s723_s16  ;;  %s158_s26 = int_to_ptr.vmem [resolvable:$true] %s157_s26 }
  0x12   : > { %s991_s24 = scalar_select %p811_p8, 1, 0 }
  0x13   : > { %p513_p9 = pneg %p811_p8  ;;  %s583_s4 = scalar_lea.hbm %s980_s1, 512 }
  0x14   : > { %p584_p12 = scmp.ne.s32.totalorder %s980_s1, %s583_s4  ;;  %p590_p5 = scmp.lt.u32.totalorder %s583_s4, %s980_s1 }
  0x15   : > { %p820_p11 = pnand %p513_p9, %p791_p1 }
  0x17   : > { %p585_p13 = pneg %p820_p11 }
  0x19   : > { %p586_p0 = pnand %p585_p13, %p584_p12 }
  0x1b   : > { %p587_p3 = pneg %p586_p0 }
  0x1d   : > { %p592_p7 = pnand %p590_p5, %p587_p3 }
  0x1f   : > { %595 = shalt.err (!%p592_p7)
}
  0x20   : > { %s596_s9 = scalar_lea.vmem %s158_s26, 512  ;;  %p604_p1 = scmp.lt.s32.totalorder %s158_s26, %s158_s26 }
  0x21   : > { %p597_p9 = scmp.ne.s32.totalorder %s158_s26, %s596_s9  ;;  %p605_p4 = scmp.lt.s32.totalorder %s596_s9, %s596_s9 }
  0x23   : > { %p599_p10 = pnand %p597_p9, %p585_p13  ;;  %p606_p8 = por %p605_p4, %p604_p1 }
  0x25   : > { %p600_p6 = pneg %p599_p10 }
  0x27   : > { %p607_p2 = pnand %p606_p8, %p600_p6 }
  0x29   : > { %610 = shalt.err (!%p607_p2)
}
  0x2a   : > { %s730_s10 = smov 128   ;;  %s731_s11 = smov 8  }
  0x2b   : > { %516 = dma.hbm_to_vmem [thread:$0]  (!%p820_p11), %s980_s1, 512, %s158_s26, [#allocation6], %s730_s10, %s730_s10, %s731_s11  }
  0x2c   : > { %p34_p1 = scmp.ge.s32.totalorder %s32_s28, 2  ;;  %s39_s25 = sadd.s32 1, %s715_s14 }
  0x2d   : > { %p46_p2 = scmp.ne.s32.totalorder %s715_s14, %s711_s13  ;;  %p47_p4 = scmp.eq.s32.totalorder %s727_s17, 0 }
  0x2e   : > { %s1008_s28 = smov (%p34_p1, %s32_s28), 0  ;;  %p994_p8 = scmp.ne.s32.totalorder %s988_s21, 0 }
  0x2f   : > { %p847_p6 = por %p47_p4, %p46_p2  ;;  %s36_s27 = ssub.s32 %s723_s16, %s1008_s28 }
  0x30   : > { %p853_p10 = por %p994_p8, %p46_p2  ;;  %p526_p12 = scmp.lt.s32.totalorder %s727_s17, 2 }
  0x31   : > { %p37_p11 = scmp.eq.s32.totalorder %s36_s27, 0  ;;  %s177_s26 = sand.u32 1, %s715_s14  }
  0x32   : > { %s468_s4 = sshll.u32 %s177_s26, 3  ;;  %s469_s6 = sshll.u32 %s723_s16, 7 }
  0x33   : > { %s862_s5 = scalar_select %p37_p11, %s715_s14, %s39_s25  }
  0x34   : > { %s868_s9 = scalar_lea.hbm %s979_s0, %s469_s6  ;;  %s181_s21 = scalar_lea.vmem [#allocation2], %s468_s4 }
  0x35   : > { %s188_s10 = sshll.u32 %s181_s21, 4  ;;  %p874_p13 = pnand %p526_p12, %p847_p6  ;;  %s870_s10 = int_to_ptr.vmem [resolvable:$true] %s188_s10 }
  0x36   : > { %s178_s18 = scalar_lea.sflag [#allocation3], %s177_s26  ;;  %s611_s19 = scalar_lea.hbm %s868_s9, 128 }
  0x37   : > { %p612_p0 = scmp.ne.s32.totalorder %s868_s9, %s611_s19  ;;  %p613_p3 = pneg %p874_p13 }
  0x38   : > { %s616_s4 = scalar_lea.hbm %s979_s0, 256  ;;  %p617_p9 = scmp.lt.u32.totalorder %s868_s9, %s979_s0 }
  0x39   : > { %p614_p5 = pnand %p613_p3, %p612_p0  ;;  %p618_p1 = scmp.lt.u32.totalorder %s616_s4, %s611_s19 }
  0x3a   : > { %p620_p4 = scmp.lt.u32.totalorder %s611_s19, %s868_s9 }
  0x3b   : > { %p615_p7 = pneg %p614_p5  ;;  %p619_p2 = por %p618_p1, %p617_p9 }
  0x3d   : > { %p621_p6 = por %p620_p4, %p619_p2 }
  0x3f   : > { %p622_p8 = pnand %p621_p6, %p615_p7 }
  0x41   : > { %625 = shalt.err (!%p622_p8)
}
  0x42   : > { %s626_s26 = scalar_lea.vmem %s870_s10, 128  ;;  %s732_s7 = smov [#allocation2]  }
  0x43   : > { %p627_p12 = scmp.ne.s32.totalorder %s870_s10, %s626_s26  ;;  %s631_s8 = sshll.u32 %s732_s7, 4  ;;  %s632_s8 = int_to_ptr.vmem [resolvable:$false] %s631_s8 }
  0x44   : > { %s633_s21 = scalar_lea.vmem %s632_s8, 256  ;;  %p634_p5 = scmp.lt.s32.totalorder %s870_s10, %s632_s8 }
  0x45   : > { %p629_p11 = pnand %p627_p12, %p613_p3  ;;  %p635_p9 = scmp.lt.s32.totalorder %s633_s21, %s626_s26 }
  0x47   : > { %p630_p0 = pneg %p629_p11  ;;  %p636_p1 = por %p635_p9, %p634_p5 }
  0x49   : > { %p637_p2 = pnand %p636_p1, %p630_p0 }
  0x4b   : > { %640 = shalt.err (!%p637_p2)
}
  0x4c   : > { %520 = dma.hbm_to_vmem [thread:$0]  (!%p874_p13), %s868_s9, 128, %s870_s10, %s178_s18  }
  0x4d   : > { %p997_p7 = scmp.ne.s32.totalorder %s991_s24, 0 }
  0x4e   : > { %s906_s19 = sand.u32 (!%p997_p7), 1, %s711_s13   ;;  %p998_p3 = scmp.ne.s32.totalorder (!%p997_p7), %s989_s22, 0 }
  0x4f   : > { %197 = sbr.rel (%p997_p7) target bundleno = 331 (0x14b), region = 32  ;;  %s471_s25 = sshll.u32 (!%p997_p7), %s906_s19, 3 }
  0x50   : > { %s200_s27 = scalar_lea.sflag (!%p997_p7), [#allocation3], %s906_s19  ;;  %s203_s4 = scalar_lea.vmem (!%p997_p7), [#allocation2], %s471_s25 }
  0x56   : > { %694 = dma.done.wait (%p998_p3), %s200_s27, 128  }
  0x57   : > { %696 = vsyncadd (%p998_p3), %s200_s27, 4294967168  ;;  %p999_p13 = scmp.ne.s32.totalorder %s987_s20, 0 }
  0x59   : > { %698 = dma.done.wait (%p999_p13), [#allocation6], 512  }
  0x5a   : > { %700 = vsyncadd (%p999_p13), [#allocation6], 4294966784  ;;  %v733_v0 = vmov 0.0|0.0   ;;  %vm734_vm0 = vmmov 0   ;;  %v735_v1 = vmov 0.0   ;;  %v237_v2 = vld [vmem:[#allocation5] sm:$0xff]  ;;  %v323_v9 = vlaneseq }
  0x5b   : > { %499 = vmatprep.subr.bf16.mxu0 %v733_v0  ;;  %496 = vmatprep.mubr.msk.f32.mxu0 %vm734_vm0, %v735_v1  ;;  %v238_v3 = vld [vmem:[#allocation5 + $0x8] sm:$0xff]  ;;  %v239_v4 = vld [vmem:[#allocation5 + $0x10] sm:$0xff]  ;;  %v240_v6 = vld [vmem:[#allocation5 + $0x18] sm:$0xff]  ;;  %vm248_vm1 = vcmask 261120   ;;  %s476_s20 = sshll.u32 %s719_s15, 3  ;;  %s480_s9 = sshll.u32 %s719_s15, 7 }
  0x5c   : > { %v500_v5 = vpack.c.bf16 %v238_v3, %v237_v2  ;;  %v503_v7 = vpack.c.bf16 %v240_v6, %v239_v4  ;;  %v236_v8 = vld [vmem:[%s203_s4] sm:$0xff]  ;;  %v324_v10 = vshrl.u32 %v323_v9, 7  ;;  %v325_v11 = vstv %s476_s20  ;;  %s232_s10 = scalar_lea.vmem [#allocation7], %s471_s25  ;;  %s930_s6 = scalar_lea.hbm %s982_s3, %s480_s9 }
  0x5d   : > { %v474_v20 = vld [vmem:[%s981_s2] ss:$0 sm:$0xff]  ;;  %s359_s11 = sshll.u32 %s232_s10, 4  ;;  %s345_s26 = scalar_lea.sflag [#allocation4], %s906_s19  ;;  %s932_s11 = int_to_ptr.vmem [resolvable:$true] %s359_s11 }
  0x5e   : > { %501 = vmatpush3.bf16.msra.mxu0 %v500_v5  ;;  %v326_v12 = vadd.s32 %v325_v11, %v324_v10  ;;  %s641_s7 = scalar_lea.vmem %s932_s11, 128  ;;  %s736_s15 = smov [#allocation7]  }
  0x5f   : > { %502 = vmatprep.subr.bf16.mxu0 %v733_v0  ;;  %p642_p4 = scmp.ne.s32.totalorder %s932_s11, %s641_s7  ;;  %s645_s8 = sshll.u32 %s736_s15, 4  ;;  %s646_s8 = int_to_ptr.vmem [resolvable:$false] %s645_s8 }
  0x60   : > { %v328_v13 = vsub.s32 0, %v326_v12  ;;  %vm327_vm2 = vcmp.lt.s32.totalorder %v326_v12, 0  ;;  %s647_s21 = scalar_lea.vmem %s646_s8, 256  ;;  %p648_p12 = scmp.lt.s32.totalorder %s932_s11, %s646_s8 }
  0x61   : > { %p643_p6 = pnand %p642_p4, %p853_p10  ;;  %p649_p11 = scmp.lt.s32.totalorder %s647_s21, %s641_s7 }
  0x62   : > { %504 = vmatpush3.bf16.msra.mxu0 %v503_v7  ;;  %v477_v14 = vmin.u32 %v328_v13, %v326_v12 }
  0x63   : > { %p644_p8 = pneg %p643_p6  ;;  %p650_p0 = por %p649_p11, %p648_p12 }
  0x64   : > { %v331_v15 = vand.u32 7, %v477_v14 }
  0x65   : > { %497 = vmatmul.mubr.msk.f32.vlgmr.msra.gmra.mrb[0].mxu0 %vm248_vm1, %v236_v8  ;;  %p651_p5 = pnand %p650_p0, %p644_p8 }
  0x66   : > { %v332_v16 = vsub.s32 0, %v331_v15 }
  0x68   : > { %v333_v17 = vsel %vm327_vm2, %v332_v16, %v331_v15 }
  0x69   : > { %vm334_vm3 = vcmp.ne.s32.totalorder %v333_v17, 0  ;;  %vm335_vm4 = vcmp.lt.s32.totalorder %v333_v17, 0  ;;  %v337_v18 = vadd.s32 8, %v333_v17 }
  0x6a   : > { %vm336_vm5 = vmand %vm335_vm4, %vm334_vm3 }
  0x6b   : > { %v338_v19 = vsel %vm336_vm5, %v337_v18, %v333_v17 }
  0x6c   : > { %vm339_vm6 = vcmp.ne.s32.totalorder %v338_v19, 0 }
  0x6d   : > { %v478_v21 = vsel %vm339_vm6, 1.0, %v735_v1 }
 0x138   : > { %v318_v22 = vpop.f32.mrb[0].mxu0 }
 0x139   : > { %v319_v23 = vadd.f32 %v474_v20, %v318_v22  ;;  %v498_v24 = vpop.f32.mrb[1].mxu0 }
 0x13b   : > { %v342_v25 = vmul.f32 %v478_v21, %v319_v23 }
 0x13d   : > { %343 = vst [vmem:[%s232_s10] sm:$0xff] %v342_v25 }
 0x13e   : > { %654 = shalt.err (!%p651_p5)
}
 0x13f   : > { %s655_s19 = scalar_lea.hbm %s930_s6, 128  ;;  %s659_s4 = scalar_lea.hbm %s982_s3, 256 }
 0x140   : > { %p656_p9 = scmp.ne.s32.totalorder %s930_s6, %s655_s19  ;;  %p660_p7 = scmp.lt.u32.totalorder %s930_s6, %s982_s3 }
 0x141   : > { %p661_p3 = scmp.lt.u32.totalorder %s659_s4, %s655_s19  ;;  %p663_p4 = scmp.lt.u32.totalorder %s655_s19, %s930_s6 }
 0x142   : > { %p657_p1 = pnand %p656_p9, %p853_p10 }
 0x143   : > { %p662_p13 = por %p661_p3, %p660_p7 }
 0x144   : > { %p658_p2 = pneg %p657_p1 }
 0x145   : > { %p664_p6 = por %p663_p4, %p662_p13 }
 0x147   : > { %p665_p8 = pnand %p664_p6, %p658_p2 }
 0x149   : > { %668 = shalt.err (!%p665_p8)
}
 0x14a   : > { %511 = dma.vmem_to_hbm [thread:$0]  (%p853_p10), %s932_s11, 128, %s930_s6, %s345_s26  }
 0x14b PF: > { %s371_s24 = sand.u32 1, %s707_s12   ;;  %p1000_p12 = scmp.ne.s32.totalorder %s990_s23, 0 }
 0x14c   : > { %p1001_p11 = scmp.ge.s32.totalorder %s727_s17, 2  ;;  %s372_s9 = scalar_lea.sflag [#allocation4], %s371_s24 }
 0x14e   : > { %p522_p0 = pnand %p1001_p11, %p1000_p12 }
 0x150   : > { %702 = dma.done.wait (!%p522_p0), %s372_s9, 128  }
 0x151   : > { %704 = vsyncadd (!%p522_p0), %s372_s9, 4294967168  ;;  %s20_s17 = sadd.s32 1, %s727_s17   ;;  %s1002_s12 = smov %s711_s13 }
 0x152   : > { %p17_p5 = scmp.ge.s32.totalorder %s20_s17, 4   ;;  %s1003_s13 = smov %s715_s14 }
 0x153   : > { %s1004_s14 = smov %s862_s5  ;;  %s1005_s15 = smov %s723_s16 }
 0x154   : > { %s1006_s16 = smov %s1008_s28  ;;  %19 = sbr.rel (!%p17_p5) target bundleno = 7 (0x7), region = 85 }
 0x15b   :  { %377 = vsyncpa [#allocation3], 1 }
 0x15c   :  { %379 = vsyncpa [#allocation3 + $0x1], 1 }
 0x15d   :  { %380 = vsyncpa [#allocation6], 1 }
 0x15e   :  { %381 = vsyncpa [#allocation4], 1 }
 0x15f   :  { %383 = vsyncpa [#allocation4 + $0x1], 1 }

</bundles_post_ra>
